<compile_context>
chip_gen: v5e
topology: v5e:2x2
jax: 0.10.0
libtpu: 0.0.40
codegen_flags: <defaults>
</compile_context>

<pallas_src>
import functools
import math

import jax
import jax.numpy as jnp
from jax.experimental import pallas as pl
from jax.experimental.pallas import tpu as pltpu


# ----------------------------------------------------------------------------
# Linear kernel: tiled matmul, bf16 MXU operands, f32 VMEM accumulator.
# ----------------------------------------------------------------------------
def _linear_kernel(x_ref, w_ref, b_ref, o_ref, acc_ref):
    # x:(tm, tk) bf16  w:(tk, tn) bf16  b:(1, tn) f32  o:(tm, tn)  acc f32.
    k = pl.program_id(2)

    @pl.when(k == 0)
    def _():
        acc_ref[...] = jnp.zeros_like(acc_ref)

    acc_ref[...] += jnp.dot(x_ref[...], w_ref[...],
                            preferred_element_type=jnp.float32)

    @pl.when(k == pl.num_programs(2) - 1)
    def _():
        # Bias added once, in the epilogue only.
        o_ref[...] = (acc_ref[...] + b_ref[...]).astype(o_ref.dtype)


def _mm_tile(dim, cap):
    """Largest multiple of 128 <= cap that divides `dim`; else the full dim
    (a full dim is always a legal Pallas block — only hit for tiny shapes)."""
    t = (cap // 128) * 128
    while t >= 128:
        if dim % t == 0:
            return t
        t -= 128
    return dim


def pallas_linear(x, w, b, *, out_dtype=jnp.float32,
                  tm_cap=512, tn_cap=512, tk_cap=1024):
    """x:(M, K) @ w:(K, N) + b:(1, N) -> (M, N).  x/w cast to bf16 once here
    (HBM + VMEM traffic is bf16); accumulation is f32 on the MXU."""
    x = x.astype(jnp.bfloat16)
    w = w.astype(jnp.bfloat16)
    b = b.astype(jnp.float32)

    M, K = x.shape
    N = w.shape[1]
    tm, tn, tk = _mm_tile(M, tm_cap), _mm_tile(N, tn_cap), _mm_tile(K, tk_cap)

    cost = pl.CostEstimate(
        flops=2 * M * N * K,
        transcendentals=0,
        bytes_accessed=2 * (M * K + K * N) + 4 * N
        + M * N * jnp.dtype(out_dtype).itemsize,
    )
    return pl.pallas_call(
        _linear_kernel,
        out_shape=jax.ShapeDtypeStruct((M, N), out_dtype),
        grid=(M // tm, N // tn, K // tk),
        in_specs=[
            pl.BlockSpec((tm, tk), lambda i, j, k: (i, k)),
            pl.BlockSpec((tk, tn), lambda i, j, k: (k, j)),
            pl.BlockSpec((1, tn), lambda i, j, k: (0, j)),
        ],
        out_specs=pl.BlockSpec((tm, tn), lambda i, j, k: (i, j)),
        scratch_shapes=[pltpu.VMEM((tm, tn), jnp.float32)],
        compiler_params=pltpu.CompilerParams(
            dimension_semantics=("parallel", "parallel", "arbitrary")),
        cost_estimate=cost,
    )(x, w, b)


# ----------------------------------------------------------------------------
# Flash-style causal attention: grid (B, H, q_tile, kv_tile), online softmax.
# ----------------------------------------------------------------------------
def _flash_attn_kernel(q_ref, k_ref, v_ref, o_ref, m_sc, l_sc, acc_sc, *, tq, tk):
    qi = pl.program_id(2)
    kv = pl.program_id(3)

    @pl.when(kv == 0)
    def _():
        m_sc[...] = jnp.full(m_sc.shape, -jnp.inf, dtype=m_sc.dtype)
        l_sc[...] = jnp.zeros_like(l_sc)
        acc_sc[...] = jnp.zeros_like(acc_sc)

    # Skip kv tiles entirely above the causal diagonal (~halves MXU/EUP work).
    @pl.when(kv * tk <= qi * tq + (tq - 1))
    def _():
        q = q_ref[0, 0]              # (tq, Dh) bf16; 1/sqrt(Dh) folded into w_attn
        k = k_ref[0, 0]              # (tk, Dh) bf16
        v = v_ref[0, 0]              # (tk, Dh) bf16

        # q @ k^T by contracting on Dh of both operands (no explicit k.T).
        s = jax.lax.dot_general(q, k, (((1,), (1,)), ((), ())),
                                preferred_element_type=jnp.float32)  # (tq, tk)

        # Causal mask (cheap VPU compare/select; only non-skipped tiles pay it).
        row = qi * tq + jax.lax.broadcasted_iota(jnp.int32, (tq, tk), 0)
        col = kv * tk + jax.lax.broadcasted_iota(jnp.int32, (tq, tk), 1)
        s = jnp.where(col <= row, s, -jnp.inf)

        # Online softmax update, statistics kept in f32.
        m_prev = m_sc[...]
        m_new = jnp.maximum(m_prev, jnp.max(s, axis=-1, keepdims=True))
        alpha = jnp.exp(m_prev - m_new)
        p = jnp.exp(s - m_new)
        l_sc[...] = alpha * l_sc[...] + jnp.sum(p, axis=-1, keepdims=True)
        acc_sc[...] = alpha * acc_sc[...] + jnp.dot(
            p.astype(jnp.bfloat16), v, preferred_element_type=jnp.float32)
        m_sc[...] = m_new

    @pl.when(kv == pl.num_programs(3) - 1)
    def _():
        inv = pl.reciprocal(l_sc[...], approx=True)   # EUP slot, ~free
        o_ref[0, 0] = (acc_sc[...] * inv).astype(o_ref.dtype)


def _seq_tile(dim, cap=256):
    t = (cap // 128) * 128
    while t >= 128:
        if dim % t == 0:
            return t
        t -= 128
    return dim


def pallas_flash_attention(q, k, v):
    """q, k, v: (B, H, T, Dh) bf16 (scale pre-folded into Q projection).
    Returns (B, H, T, Dh) bf16 causal attention."""
    B, H, T, Dh = q.shape
    tq = _seq_tile(T)
    tk = _seq_tile(T)
    nq, nk = T // tq, T // tk

    cost = pl.CostEstimate(
        flops=2 * B * H * T * T * Dh,            # causal ~halves the 4x count
        transcendentals=B * H * T * T // 2,
        bytes_accessed=2 * 4 * B * H * T * Dh,   # bf16 q,k,v in + o out
    )
    kernel = functools.partial(_flash_attn_kernel, tq=tq, tk=tk)
    return pl.pallas_call(
        kernel,
        out_shape=jax.ShapeDtypeStruct((B, H, T, Dh), jnp.bfloat16),
        grid=(B, H, nq, nk),
        in_specs=[
            pl.BlockSpec((1, 1, tq, Dh), lambda b, h, qi, kv: (b, h, qi, 0)),
            pl.BlockSpec((1, 1, tk, Dh), lambda b, h, qi, kv: (b, h, kv, 0)),
            pl.BlockSpec((1, 1, tk, Dh), lambda b, h, qi, kv: (b, h, kv, 0)),
        ],
        out_specs=pl.BlockSpec((1, 1, tq, Dh), lambda b, h, qi, kv: (b, h, qi, 0)),
        scratch_shapes=[
            pltpu.VMEM((tq, 1), jnp.float32),    # running max
            pltpu.VMEM((tq, 1), jnp.float32),    # running denom
            pltpu.VMEM((tq, Dh), jnp.float32),   # running numerator
        ],
        compiler_params=pltpu.CompilerParams(
            dimension_semantics=("parallel", "parallel", "parallel", "arbitrary")),
        cost_estimate=cost,
    )(q, k, v)


# ----------------------------------------------------------------------------
# Full forward
# ----------------------------------------------------------------------------
def d_commune_forward(x, params, num_heads):
    """Faithful port of D_Commune.forward. x: (B, T, C)."""
    B, T, C = x.shape
    Dh = C // num_heads
    scale = Dh ** -0.5

    # One-time parameter prep: fold 1/sqrt(Dh) into the Q projection columns
    # and keep MXU weight operands in bf16 (halves GEMM HBM traffic).
    w_attn = params["w_attn"].at[:, C:2 * C].multiply(scale).astype(jnp.bfloat16)
    b_attn = params["b_attn"].at[:, C:2 * C].multiply(scale).astype(jnp.float32)
    w_proj = params["w_proj"].astype(jnp.bfloat16)
    b_proj = params["b_proj"].astype(jnp.float32)

    # c_attn — output kept bf16 so the attention kernel DMAs bf16 from HBM.
    kqv = pallas_linear(x.reshape(B * T, C), w_attn, b_attn,
                        out_dtype=jnp.bfloat16)                   # (B*T, 3C)

    # Split (K first, as in torch) and lay out per-head (B, H, T, Dh) so the
    # attention BlockSpecs keep the full head dim on the lane axis.
    kqv = kqv.reshape(B, T, 3, num_heads, Dh)
    k = kqv[:, :, 0].transpose(0, 2, 1, 3)
    q = kqv[:, :, 1].transpose(0, 2, 1, 3)
    v = kqv[:, :, 2].transpose(0, 2, 1, 3)
    # TODO(synk): the split/transpose above is a small bf16 XLA relayout
    # through HBM; it could be folded into the attention index_maps when
    # Dh % 128 == 0.

    attn = pallas_flash_attention(q, k, v)                        # (B, H, T, Dh)
    attn = attn.transpose(0, 2, 1, 3).reshape(B * T, C)           # merge heads

    out = pallas_linear(attn, w_proj, b_proj, out_dtype=jnp.float32)
    return out.reshape(B, T, C)


# ----------------------------------------------------------------------------
# Reference (pure JAX, f32) for sanity checking
# ----------------------------------------------------------------------------
def d_commune_reference(x, params, num_heads):
    B, T, C = x.shape
    Dh = C // num_heads
    kqv = x.reshape(B * T, C) @ params["w_attn"] + params["b_attn"]
    kqv = kqv.reshape(B, T, 3 * C)
    K, Q, V = kqv[..., :C], kqv[..., C:2 * C], kqv[..., 2 * C:]
    K = K.reshape(B, T, num_heads, Dh).transpose(0, 2, 1, 3)
    Q = Q.reshape(B, T, num_heads, Dh).transpose(0, 2, 1, 3)
    V = V.reshape(B, T, num_heads, Dh).transpose(0, 2, 1, 3)
    s = jnp.einsum("bhqd,bhkd->bhqk", Q, K) * (Dh ** -0.5)
    mask = jnp.tril(jnp.ones((T, T), dtype=bool))
    s = jnp.where(mask[None, None], s, -jnp.inf)
    w = jax.nn.softmax(s, axis=-1)
    a = jnp.einsum("bhqk,bhkd->bhqd", w, V)
    a = a.transpose(0, 2, 1, 3).reshape(B, T, C)
    return (a.reshape(B * T, C) @ params["w_proj"] + params["b_proj"]).reshape(B, T, C)


# ----------------------------------------------------------------------------
# Main
# ----------------------------------------------------------------------------
if __name__ == "__main__":
    # small D_Settings-consistent shapes
    BATCH = 2
    BLOCK_SIZE = 8        # T
    NUM_EMBED = 32        # C
    NUM_HEADS = 4
    assert NUM_EMBED % NUM_HEADS == 0

    key = jax.random.PRNGKey(0)
    kx, kwa, kba, kwp, kbp = jax.random.split(key, 5)

    x = jax.random.normal(kx, (BATCH, BLOCK_SIZE, NUM_EMBED), dtype=jnp.float32)

    # deterministic parameter init (nn.Linear shapes, stored pre-transposed)
    scale_attn = 1.0 / math.sqrt(NUM_EMBED)
    params = {
        "w_attn": jax.random.uniform(kwa, (NUM_EMBED, 3 * NUM_EMBED),
                                     minval=-scale_attn, maxval=scale_attn,
                                     dtype=jnp.float32),
        "b_attn": jax.random.uniform(kba, (1, 3 * NUM_EMBED),
                                     minval=-scale_attn, maxval=scale_attn,
                                     dtype=jnp.float32),
        "w_proj": jax.random.uniform(kwp, (NUM_EMBED, NUM_EMBED),
                                     minval=-scale_attn, maxval=scale_attn,
                                     dtype=jnp.float32),
        "b_proj": jax.random.uniform(kbp, (1, NUM_EMBED),
                                     minval=-scale_attn, maxval=scale_attn,
                                     dtype=jnp.float32),
    }

    out = d_commune_forward(x, params, NUM_HEADS)
    out = jax.block_until_ready(out)

    ref = d_commune_reference(x, params, NUM_HEADS)
    assert out.shape == (BATCH, BLOCK_SIZE, NUM_EMBED)
    # bf16 activations/weights + approx reciprocal: compare against the f32
    # reference with a correspondingly loosened tolerance.
    assert jnp.allclose(out, ref, atol=5e-2, rtol=5e-2), "mismatch vs reference"

    print("KERNEL_OK")
</pallas_src>

<mosaic_0001>
module attributes {stable_mosaic.version = 11 : i64} {
  func.func @_linear_kernel(%arg0: i32, %arg1: i32, %arg2: i32, %arg3: memref<16x32xbf16, #tpu.memory_space<vmem>>, %arg4: memref<32x96xbf16, #tpu.memory_space<vmem>>, %arg5: memref<1x96xf32, #tpu.memory_space<vmem>>, %arg6: memref<16x96xbf16, #tpu.memory_space<vmem>>, %arg7: memref<16x96xf32, #tpu.memory_space<vmem>>) attributes {dimension_semantics = [#tpu.dimension_semantics<parallel>, #tpu.dimension_semantics<parallel>, #tpu.dimension_semantics<arbitrary>], iteration_bounds = array<i64: 1, 1, 1>, scalar_prefetch = 0 : i64, scratch_operands = 1 : i64, tpu.core_type = #tpu.core_type<tc>, window_params = [{transform_indices = @transform_0, window_bounds = array<i64: 16, 32>}, {transform_indices = @transform_1, window_bounds = array<i64: 32, 96>}, {transform_indices = @transform_2, window_bounds = array<i64: 1, 96>}, {transform_indices = @transform_3, window_bounds = array<i64: 16, 96>}]} {
    %c0_i32 = arith.constant 0 : i32
    %0 = arith.cmpi eq, %arg2, %c0_i32 : i32
    %1 = arith.extui %0 : i1 to i32
    %c0_i32_0 = arith.constant 0 : i32
    %2 = arith.cmpi ne, %1, %c0_i32_0 : i32
    scf.if %2 {
      %cst_10 = arith.constant 0.000000e+00 : f32
      %12 = vector.broadcast %cst_10 : f32 to vector<16x96xf32>
      %c0_11 = arith.constant 0 : index
      %c0_12 = arith.constant 0 : index
      %13 = vector.load %arg7[%c0_11, %c0_12] : memref<16x96xf32, #tpu.memory_space<vmem>>, vector<16x96xf32>
      tpu.vector_store %arg7[%c0_11, %c0_12], %12 {strides = array<i32>} : memref<16x96xf32, #tpu.memory_space<vmem>>, vector<16x96xf32>,
    } else {
    }
    %c0 = arith.constant 0 : index
    %c0_1 = arith.constant 0 : index
    %3 = vector.load %arg7[%c0, %c0_1] : memref<16x96xf32, #tpu.memory_space<vmem>>, vector<16x96xf32>
    %c0_2 = arith.constant 0 : index
    %c0_3 = arith.constant 0 : index
    %4 = vector.load %arg3[%c0_2, %c0_3] : memref<16x32xbf16, #tpu.memory_space<vmem>>, vector<16x32xbf16>
    %c0_4 = arith.constant 0 : index
    %c0_5 = arith.constant 0 : index
    %5 = vector.load %arg4[%c0_4, %c0_5] : memref<32x96xbf16, #tpu.memory_space<vmem>>, vector<32x96xbf16>
    %cst = arith.constant dense<0.000000e+00> : vector<16x96xf32>
    %6 = tpu.matmul %4, %5, %cst {dimension_numbers = #tpu.dot_dimension_numbers<[1], [0], [0], [1], [0, 0, 1, 1], [], []>} : vector<16x32xbf16>, vector<32x96xbf16>, vector<16x96xf32> -> vector<16x96xf32>
    %7 = arith.addf %3, %6 : vector<16x96xf32>
    %c0_6 = arith.constant 0 : index
    %c0_7 = arith.constant 0 : index
    %8 = vector.load %arg7[%c0_6, %c0_7] : memref<16x96xf32, #tpu.memory_space<vmem>>, vector<16x96xf32>
    tpu.vector_store %arg7[%c0_6, %c0_7], %7 {strides = array<i32>} : memref<16x96xf32, #tpu.memory_space<vmem>>, vector<16x96xf32>,
    %c0_i32_8 = arith.constant 0 : i32
    %9 = arith.cmpi eq, %arg2, %c0_i32_8 : i32
    %10 = arith.extui %9 : i1 to i32
    %c0_i32_9 = arith.constant 0 : i32
    %11 = arith.cmpi ne, %10, %c0_i32_9 : i32
    scf.if %11 {
      %c0_10 = arith.constant 0 : index
      %c0_11 = arith.constant 0 : index
      %12 = vector.load %arg7[%c0_10, %c0_11] : memref<16x96xf32, #tpu.memory_space<vmem>>, vector<16x96xf32>
      %c0_12 = arith.constant 0 : index
      %c0_13 = arith.constant 0 : index
      %13 = vector.load %arg5[%c0_12, %c0_13] : memref<1x96xf32, #tpu.memory_space<vmem>>, vector<1x96xf32>
      %14 = vector.broadcast %13 : vector<1x96xf32> to vector<16x96xf32>
      %15 = arith.addf %12, %14 : vector<16x96xf32>
      %16 = arith.truncf %15 : vector<16x96xf32> to vector<16x96xbf16>
      %c0_14 = arith.constant 0 : index
      %c0_15 = arith.constant 0 : index
      %17 = vector.load %arg6[%c0_14, %c0_15] : memref<16x96xbf16, #tpu.memory_space<vmem>>, vector<16x96xbf16>
      tpu.vector_store %arg6[%c0_14, %c0_15], %16 {strides = array<i32>} : memref<16x96xbf16, #tpu.memory_space<vmem>>, vector<16x96xbf16>,
    } else {
    }
    return
  }
  func.func @transform_0(%arg0: i32, %arg1: i32, %arg2: i32) -> (i32, i32) {
    %c0_i32 = arith.constant 0 : i32
    return %arg0, %arg2 : i32, i32
  }
  func.func @transform_1(%arg0: i32, %arg1: i32, %arg2: i32) -> (i32, i32) {
    %c0_i32 = arith.constant 0 : i32
    return %arg2, %arg1 : i32, i32
  }
  func.func @transform_2(%arg0: i32, %arg1: i32, %arg2: i32) -> (i32, i32) {
    %c0_i32 = arith.constant 0 : i32
    %c0_i32_0 = arith.constant 0 : i32
    return %c0_i32, %arg1 : i32, i32
  }
  func.func @transform_3(%arg0: i32, %arg1: i32, %arg2: i32) -> (i32, i32) {
    %c0_i32 = arith.constant 0 : i32
    return %arg0, %arg1 : i32, i32
  }
}

</mosaic_0001>

<bundles_post_ra>
// kernel: tpu_custom_call.1
= control target key start
LH: loop header
LB: loop body
LE: loop exit
PB: predicated region body
PF: predicated region fallthrough
CT: control target
= control target key end

     0   :  { %8 = vsyncpa [#allocation4], 0  ;;  %s291_s0 = inlined_call_operand.hbm [shape: bf16[16,32], index: 0, kind: input, shape index: {}]   ;;  %s292_s1 = inlined_call_operand.hbm [shape: bf16[32,96], index: 1, kind: input, shape index: {}]   ;;  %s293_s2 = inlined_call_operand.vmem [shape: f32[1,96], index: 2, kind: input, shape index: {}]   ;;  %s294_s3 = inlined_call_operand.hbm [shape: bf16[16,96], index: 3, kind: output, shape index: {}]  }
   0x1   :  { %9 = vsyncpa [#allocation7], 0 }
   0x2   :  { %10 = vsyncpa [#allocation5], 0  ;;  %s15_s14 = sshll.u32 %s291_s0, 4  ;;  %s240_s15 = smov [#allocation3]   ;;  %s16_s14 = int_to_ptr.hbm [resolvable:$true] %s15_s14 }
   0x3   :  { %s17_s16 = sshll.u32 %s240_s15, 4  ;;  %s28_s19 = sshll.u32 %s292_s1, 4  ;;  %s18_s16 = int_to_ptr.vmem [resolvable:$true] %s17_s16  ;;  %s29_s19 = int_to_ptr.hbm [resolvable:$true] %s28_s19 }
   0x4   :  { %s241_s20 = smov 64   ;;  %s242_s21 = smov 4  }
   0x5   :  { %23 = dma.hbm_to_vmem [thread:$0]  %s16_s14, 128, %s18_s16, [#allocation4], %s241_s20, %s241_s20, %s242_s21  }
   0x6   :  { %s243_s22 = smov [#allocation6]  }
   0x7   :  { %s30_s23 = sshll.u32 %s243_s22, 4  ;;  %s31_s23 = int_to_ptr.vmem [resolvable:$true] %s30_s23 }
   0x8   :  { %36 = dma.hbm_to_vmem [thread:$0]  %s29_s19, 256, %s31_s23, [#allocation7], %s241_s20, %s241_s20, %s242_s21  }
   0x9   :  { %234 = dma.done.wait [#allocation4], 128  }
   0xa   :  { %235 = vsyncadd [#allocation4], 4294967168 }
   0xb   :  { %236 = dma.done.wait [#allocation7], 256  }
   0xc   :  { %237 = vsyncadd [#allocation7], 4294967040  ;;  %vm52_vm0 = vcmask 785408   ;;  %v244_v0 = vmov 0.0   ;;  %v154_v1 = vld [vmem:[#allocation6 + $0x8] sm:$0xff]  ;;  %v153_v2 = vld [vmem:[#allocation6] sm:$0xff] }
   0xd   :  { %53 = vst.msk [vmem:[#allocation2] sm:$0xff] %vm52_vm0, %v244_v0  ;;  %90 = vmatpush.bf16.msra.mxu0 %v154_v1  ;;  %v152_v3 = vld [vmem:[#allocation3] sm:$0xff]  ;;  %vm80_vm1 = vcmask 261120   ;;  %v161_v8 = vld [vmem:[%s293_s2] ss:$0 sm:$0xff]  ;;  %vm116_vm2 = vcmask 781312  }
   0xe   :  { %54 = vst.msk [vmem:[#allocation2 + $0x8] sm:$0xff] %vm52_vm0, %v244_v0  ;;  %s245_s24 = smov [#allocation8]   ;;  %s125_s28 = sshll.u32 %s294_s3, 4  ;;  %s126_s28 = int_to_ptr.hbm [resolvable:$true] %s125_s28 }
   0xf   :  { %s123_s25 = sshll.u32 %s245_s24, 4  ;;  %s124_s25 = int_to_ptr.vmem [resolvable:$true] %s123_s25 }
  0x11   :  { %91 = vmatpush.bf16.msra.mxu0 %v153_v2 }
  0x14   :  { %151 = vmatmul.msk.bf16.vlgmr.msra.gmra.mxu0 %vm80_vm1, %v152_v3  ;;  %v55_v4 = vld [vmem:[#allocation2] sm:$0xff] }
  0x15   :  { %v56_v7 = vld [vmem:[#allocation2 + $0x8] sm:$0xff] }
  0x91   :  { %v93_v5 = vpop.f32.mrf.mxu0 }
  0x92   :  { %v98_v6 = vadd.f32 %v93_v5, %v55_v4 }
  0x94   :  { %101 = vst.msk [vmem:[#allocation2] sm:$0xff] %vm52_vm0, %v98_v6 }
  0x99   :  { %v95_v9 = vpop.f32.mrf.mxu0 }
  0x9a   :  { %v99_v10 = vadd.f32 %v95_v9, %v56_v7 }
  0x9b   :  { %v106_v11 = vld [vmem:[#allocation2] sm:$0xff] }
  0x9c   :  { %102 = vst.msk [vmem:[#allocation2 + $0x8] sm:$0xff] %vm52_vm0, %v99_v10  ;;  %v112_v12 = vadd.f32 %v161_v8, %v106_v11 }
  0x9e   :  { %v114_v13 = vpack.c.bf16 %v112_v12, %v112_v12 }
  0xa0   :  { %117 = vst.msk [vmem:[#allocation8] sm:$0xf] %vm116_vm2, %v114_v13 }
  0xa3   :  { %v107_v14 = vld [vmem:[#allocation2 + $0x8] sm:$0xff] }
  0xa4   :  { %v113_v15 = vadd.f32 %v161_v8, %v107_v14 }
  0xa6   :  { %v115_v16 = vpack.c.bf16 %v113_v15, %v113_v15 }
  0xa8   :  { %118 = vst.msk [vmem:[#allocation8 + $0x4] sm:$0xf] %vm116_vm2, %v115_v16 }
  0xa9   :  { %131 = dma.vmem_to_hbm [thread:$0]  %s124_s25, 128, %s126_s28, [#allocation5], %s241_s20, %s241_s20, %s242_s21  }
  0xaa   :  { %238 = dma.done.wait [#allocation5], 128  }
  0xab   :  { %239 = vsyncadd [#allocation5], 4294967168 }
  0xac   :  { %136 = vsyncpa [#allocation4], 1 }
  0xad   :  { %137 = vsyncpa [#allocation7], 1 }
  0xae   :  { %138 = vsyncpa [#allocation5], 1 }

</bundles_post_ra>
